<compile_context>
chip_gen: v6e
topology: v6e:2x2x1
jax: 0.10.0
libtpu: 0.0.40
codegen_flags: <defaults>
</compile_context>

<pallas_src>
import functools

import numpy as np
import jax
import jax.numpy as jnp
from jax.experimental import pallas as pl
from jax.experimental.pallas import tpu as pltpu

DROP_P = 0.0                  # lstm_drop = "0.0"
DROP_KEEP = 1.0 - DROP_P      # test_flag == True -> drop_mask is this scalar


# -----------------------------------------------------------------------------
# Block-circulant weight construction (static host-side index math; this is the
# `vector_ih[indx_ih].view(...).t()` parameter-building part of BCMLSTM.forward).
# Pure static parameter prep, done outside the kernel.
# -----------------------------------------------------------------------------
def block_indx(k, rc, cc):
    rc = int((rc + k - 1) // k) * k
    cc = int((cc + k - 1) // k) * k
    i = np.arange(0, k, 1).reshape([1, k])
    j = np.arange(0, -k, -1).reshape([k, 1])
    indx = (i + j + k) % k
    m = np.tile(indx, [rc // k, cc // k])
    offset = np.arange(0, rc * cc)
    oi = offset // cc // k
    oj = offset % cc // k
    offset = (oi * cc + oj * k).reshape([rc, cc])
    return m + offset


def build_block_circulant_weights(vector_ih, vector_hh, inp_dim, hidden, blk):
    G = 4 * hidden
    tgt_ih = inp_dim * G // blk
    tgt_hh = hidden * G // blk
    idx_ih = (block_indx(blk, inp_dim, G) + tgt_ih) % tgt_ih
    idx_hh = (block_indx(blk, hidden, G) + tgt_hh) % tgt_hh
    idx_ih = idx_ih[:inp_dim, :G]
    idx_hh = idx_hh[:hidden, :G]
    # F.linear(x, W_ih, b) with W_ih = gathered.view(D,4H).t()  <=>  x @ wihT + b
    wihT = vector_ih[idx_ih.reshape(-1)].reshape(inp_dim, G)
    whhT = vector_hh[idx_hh.reshape(-1)].reshape(hidden, G)
    return wihT, whhT


# -----------------------------------------------------------------------------
# Fused kernel: per time-chunk input projection + LSTM recurrence.
# -----------------------------------------------------------------------------
def bcmlstm_fused_kernel(x_ref, wihT_ref, b_ref, whhT_ref, out_ref,
                         wx_scr, h_scr, c_scr, *,
                         hidden, batch, drop_keep, unroll):
    chunk = pl.program_id(0)

    @pl.when(chunk == 0)
    def _():
        h_scr[...] = jnp.zeros_like(h_scr)   # h_init = zeros (per forward call)
        c_scr[...] = jnp.zeros_like(c_scr)   # c_init = zeros

    H = hidden
    B = batch                                # padded batch (multiple of 8)
    G = 4 * H
    TT = out_ref.shape[0]
    H_pad = out_ref.shape[-1]                # lane-dense (multiple of 128)

    # ---- fused stage 1: chunk input projection, one lane-dense MXU matmul ----
    # bf16 operands, f32 accumulate; bias folded in; result parked in VMEM.
    wx_scr[...] = (
        jnp.dot(x_ref[...].astype(jnp.bfloat16), wihT_ref[...],
                preferred_element_type=jnp.float32)
        + b_ref[...]
    )

    whhT = whhT_ref[...]                     # (H_pad, G) bf16, rows >= H are zero

    # Per-lane scale so ONE EUP push (tanh) serves all four gates:
    #   sigmoid(x) = 0.5*(tanh(0.5*x)+1) for f,i,o lanes; plain tanh for candidate.
    lane = jax.lax.broadcasted_iota(jnp.int32, (1, G), 1)
    gate_scale = jnp.where(lane < 3 * H, 0.5, 1.0).astype(jnp.float32)

    def step(tt, carry):
        h128, cell = carry                   # (B, H_pad) f32, (B, H) f32
        row = pl.multiple_of(tt * B, B)
        # Single fused recurrent matmul per step (all four gates, bf16 operands).
        g = wx_scr[pl.ds(row, B), :] + jnp.dot(
            h128.astype(jnp.bfloat16), whhT, preferred_element_type=jnp.float32)
        t = jnp.tanh(g * gate_scale)         # one EUP push over the full (B, 4H) tile
        ft = 0.5 * (t[:, 0 * H:1 * H] + 1.0)
        it = 0.5 * (t[:, 1 * H:2 * H] + 1.0)
        ot = 0.5 * (t[:, 2 * H:3 * H] + 1.0)
        cand = t[:, 3 * H:4 * H]
        if drop_keep != 1.0:                 # trace-time: removed when p == 0
            cand = cand * drop_keep
        cell = it * cand + ft * cell
        h = ot * jnp.tanh(cell)              # second (final) EUP push this step
        # Lane-dense 128-wide output row; lanes >= H carry zeros (sliced off later).
        if H_pad > H:
            h128 = jnp.concatenate(
                [h, jnp.zeros((h.shape[0], H_pad - H), h.dtype)], axis=-1)
        else:
            h128 = h
        out_ref[tt] = h128.astype(out_ref.dtype)
        return h128, cell

    h128, cell = jax.lax.fori_loop(0, TT, step, (h_scr[...], c_scr[...]),
                                   unroll=unroll)
    h_scr[...] = h128
    c_scr[...] = cell


def _round_up(n, m):
    return ((n + m - 1) // m) * m


def _largest_divisor_leq(n, cap):
    for d in range(min(n, cap), 0, -1):
        if n % d == 0:
            return d
    return 1


def bcmlstm_forward(x, wihT, bih, whhT, *, drop_p=DROP_P, time_chunk=None):
    """Single-layer unidirectional BCMLSTM forward. x is time-major (T, B, D)."""
    T, B, D = x.shape
    H = whhT.shape[0]
    G = 4 * H
    drop_keep = 1.0 - drop_p

    B_pad = max(8, _round_up(B, 8))          # fill sublanes
    H_pad = _round_up(H, 128)                # lane-dense output / state

    # Pad batch with zero rows (independent, sliced off at the end) and pad
    # W_hh rows to H_pad with zeros so the padded h lanes never contribute.
    x_pad = jnp.pad(x, ((0, 0), (0, B_pad - B), (0, 0))) if B_pad != B else x
    x2d = x_pad.reshape(T * B_pad, D)
    whhT_pad = jnp.pad(whhT, ((0, H_pad - H), (0, 0))) if H_pad != H else whhT

    wihT_bf = wihT.astype(jnp.bfloat16)      # MXU operands in bf16
    whhT_bf = whhT_pad.astype(jnp.bfloat16)
    bih2d = bih.reshape(1, G).astype(jnp.float32)

    TT = time_chunk if time_chunk is not None else _largest_divisor_leq(T, 64)
    assert T % TT == 0
    unroll = min(TT, 8)                      # partial unroll: LLO visibility, no spills

    kernel = functools.partial(bcmlstm_fused_kernel, hidden=H, batch=B_pad,
                               drop_keep=drop_keep, unroll=unroll)

    out = pl.pallas_call(
        kernel,
        out_shape=jax.ShapeDtypeStruct((T, B_pad, H_pad), jnp.float32),
        grid_spec=pltpu.PrefetchScalarGridSpec(
            num_scalar_prefetch=0,
            grid=(T // TT,),
            in_specs=[
                pl.BlockSpec((TT * B_pad, D), lambda c: (c, 0)),   # x chunk
                pl.BlockSpec((D, G), lambda c: (0, 0)),            # W_ih^T (fetched once)
                pl.BlockSpec((1, G), lambda c: (0, 0)),            # bias_ih
                pl.BlockSpec((H_pad, G), lambda c: (0, 0)),        # W_hh^T (fetched once)
            ],
            out_specs=pl.BlockSpec((TT, B_pad, H_pad), lambda c: (c, 0, 0)),
            scratch_shapes=[
                pltpu.VMEM((TT * B_pad, G), jnp.float32),          # chunk's wx
                pltpu.VMEM((B_pad, H_pad), jnp.float32),           # h state (lane-dense)
                pltpu.VMEM((B_pad, H), jnp.float32),               # c state
            ],
        ),
        compiler_params=pltpu.CompilerParams(
            dimension_semantics=("arbitrary",)),   # recurrence => sequential grid
    )(x2d, wihT_bf, bih2d, whhT_bf)

    return out[:, :B, :H]


# --------------------------- pure-JAX reference -------------------------------
def bcmlstm_reference(x, wihT, bih, whhT, *, drop_keep=DROP_KEEP,
                      mxu_dtype=jnp.float32):
    """Plain-JAX LSTM reference; mxu_dtype controls matmul operand precision."""
    T, B, D = x.shape
    H = whhT.shape[0]
    prec = jax.lax.Precision.HIGHEST if mxu_dtype == jnp.float32 else None
    wih = wihT.astype(mxu_dtype)
    whh = whhT.astype(mxu_dtype)
    wx = jnp.dot(x.reshape(T * B, D).astype(mxu_dtype), wih,
                 precision=prec, preferred_element_type=jnp.float32) + bih
    wx = wx.reshape(T, B, 4 * H)

    def step(carry, wx_t):
        h, c = carry
        g = wx_t + jnp.dot(h.astype(mxu_dtype), whh,
                           precision=prec, preferred_element_type=jnp.float32)
        ft = jax.nn.sigmoid(g[:, 0 * H:1 * H])
        it = jax.nn.sigmoid(g[:, 1 * H:2 * H])
        ot = jax.nn.sigmoid(g[:, 2 * H:3 * H])
        c = it * jnp.tanh(g[:, 3 * H:4 * H]) * drop_keep + ft * c
        h = ot * jnp.tanh(c)
        return (h, c), h

    init = (jnp.zeros((B, H), jnp.float32), jnp.zeros((B, H), jnp.float32))
    _, hs = jax.lax.scan(step, init, wx)
    return hs


if __name__ == "__main__":
    # Small shapes implied by the module: seq T=8, batch B=2, inp_dim D=16,
    # hidden H=32 (lstm_lay="32"), block_size=8.
    T, B, D, H, BLK = 8, 2, 16, 32, 8
    G = 4 * H

    key = jax.random.PRNGKey(0)
    kx, kih, khh = jax.random.split(key, 3)

    x = jax.random.normal(kx, (T, B, D), jnp.float32)            # time-major
    # lstm_orthinit=True -> init.normal_(std=0.1) on the circulant vectors
    vector_ih = 0.1 * jax.random.normal(kih, (D * G // BLK,), jnp.float32)
    vector_hh = 0.1 * jax.random.normal(khh, (H * G // BLK,), jnp.float32)
    bias_ih = jnp.full((G,), 0.1, jnp.float32)                   # torch fill_(0.1)

    wihT, whhT = build_block_circulant_weights(vector_ih, vector_hh, D, H, BLK)

    fwd = jax.jit(bcmlstm_forward)
    out = jax.block_until_ready(fwd(x, wihT, bias_ih, whhT))
    assert out.shape == (T, B, H)

    # Tight check vs a JAX reference using the same bf16-operand / f32-accumulate
    # matmul recipe (validates the Pallas kernel itself).
    ref_bf16 = jax.block_until_ready(
        bcmlstm_reference(x, wihT, bias_ih, whhT, mxu_dtype=jnp.bfloat16))
    err = float(jnp.max(jnp.abs(out - ref_bf16)))
    assert err < 1e-3, f"Pallas BCMLSTM mismatch vs matched-precision reference: {err}"

    # Loose sanity check vs full-f32 math (bounds bf16 MXU-operand rounding drift).
    ref_f32 = jax.block_until_ready(
        bcmlstm_reference(x, wihT, bias_ih, whhT, mxu_dtype=jnp.float32))
    err32 = float(jnp.max(jnp.abs(out - ref_f32)))
    assert err32 < 2.5e-2, f"Pallas BCMLSTM drifted from f32 reference: {err32}"

    print("KERNEL_OK")
</pallas_src>

<mosaic_0001>
module attributes {stable_mosaic.version = 11 : i64} {
  func.func @bcmlstm_fused_kernel(%arg0: i32, %arg1: memref<64x16xf32, #tpu.memory_space<vmem>>, %arg2: memref<16x128xbf16, #tpu.memory_space<vmem>>, %arg3: memref<1x128xf32, #tpu.memory_space<vmem>>, %arg4: memref<128x128xbf16, #tpu.memory_space<vmem>>, %arg5: memref<8x8x128xf32, #tpu.memory_space<vmem>>, %arg6: memref<64x128xf32, #tpu.memory_space<vmem>>, %arg7: memref<8x128xf32, #tpu.memory_space<vmem>>, %arg8: memref<8x32xf32, #tpu.memory_space<vmem>>) attributes {dimension_semantics = [#tpu.dimension_semantics<arbitrary>], iteration_bounds = array<i64: 1>, scalar_prefetch = 0 : i64, scratch_operands = 3 : i64, tpu.core_type = #tpu.core_type<tc>, window_params = [{transform_indices = @transform_0, window_bounds = array<i64: 64, 16>}, {pipeline_mode = #tpu.pipeline_mode<synchronous>, transform_indices = @transform_1, window_bounds = array<i64: 16, 128>}, {pipeline_mode = #tpu.pipeline_mode<synchronous>, transform_indices = @transform_2, window_bounds = array<i64: 1, 128>}, {pipeline_mode = #tpu.pipeline_mode<synchronous>, transform_indices = @transform_3, window_bounds = array<i64: 128, 128>}, {transform_indices = @transform_4, window_bounds = array<i64: 8, 8, 128>}]} {
    %c0_i32 = arith.constant 0 : i32
    %0 = arith.cmpi eq, %arg0, %c0_i32 : i32
    %1 = arith.extui %0 : i1 to i32
    %c0_i32_0 = arith.constant 0 : i32
    %2 = arith.cmpi ne, %1, %c0_i32_0 : i32
    scf.if %2 {
      %cst_117 = arith.constant 0.000000e+00 : f32
      %318 = vector.broadcast %cst_117 : f32 to vector<8x128xf32>
      %c0_118 = arith.constant 0 : index
      %c0_119 = arith.constant 0 : index
      %319 = vector.load %arg7[%c0_118, %c0_119] : memref<8x128xf32, #tpu.memory_space<vmem>>, vector<8x128xf32>
      tpu.vector_store %arg7[%c0_118, %c0_119], %318 {strides = array<i32>} : memref<8x128xf32, #tpu.memory_space<vmem>>, vector<8x128xf32>,
      %cst_120 = arith.constant 0.000000e+00 : f32
      %320 = vector.broadcast %cst_120 : f32 to vector<8x32xf32>
      %c0_121 = arith.constant 0 : index
      %c0_122 = arith.constant 0 : index
      %321 = vector.load %arg8[%c0_121, %c0_122] : memref<8x32xf32, #tpu.memory_space<vmem>>, vector<8x32xf32>
      tpu.vector_store %arg8[%c0_121, %c0_122], %320 {strides = array<i32>} : memref<8x32xf32, #tpu.memory_space<vmem>>, vector<8x32xf32>,
    } else {
    }
    %c0 = arith.constant 0 : index
    %c0_1 = arith.constant 0 : index
    %3 = vector.load %arg1[%c0, %c0_1] : memref<64x16xf32, #tpu.memory_space<vmem>>, vector<64x16xf32>
    %4 = arith.truncf %3 : vector<64x16xf32> to vector<64x16xbf16>
    %c0_2 = arith.constant 0 : index
    %c0_3 = arith.constant 0 : index
    %5 = vector.load %arg2[%c0_2, %c0_3] : memref<16x128xbf16, #tpu.memory_space<vmem>>, vector<16x128xbf16>
    %cst = arith.constant dense<0.000000e+00> : vector<64x128xf32>
    %6 = tpu.matmul %4, %5, %cst {dimension_numbers = #tpu.dot_dimension_numbers<[1], [0], [0], [1], [0, 0, 1, 1], [], []>} : vector<64x16xbf16>, vector<16x128xbf16>, vector<64x128xf32> -> vector<64x128xf32>
    %c0_4 = arith.constant 0 : index
    %c0_5 = arith.constant 0 : index
    %7 = vector.load %arg3[%c0_4, %c0_5] : memref<1x128xf32, #tpu.memory_space<vmem>>, vector<1x128xf32>
    %8 = vector.broadcast %7 : vector<1x128xf32> to vector<64x128xf32>
    %9 = arith.addf %6, %8 : vector<64x128xf32>
    %c0_6 = arith.constant 0 : index
    %c0_7 = arith.constant 0 : index
    %10 = vector.load %arg6[%c0_6, %c0_7] : memref<64x128xf32, #tpu.memory_space<vmem>>, vector<64x128xf32>
    tpu.vector_store %arg6[%c0_6, %c0_7], %9 {strides = array<i32>} : memref<64x128xf32, #tpu.memory_space<vmem>>, vector<64x128xf32>,
    %c0_8 = arith.constant 0 : index
    %c0_9 = arith.constant 0 : index
    %11 = vector.load %arg4[%c0_8, %c0_9] : memref<128x128xbf16, #tpu.memory_space<vmem>>, vector<128x128xbf16>
    %12 = tpu.iota {dimensions = array<i32: 1>} : vector<1x128xi32>
    %c96_i32 = arith.constant 96 : i32
    %13 = vector.broadcast %c96_i32 : i32 to vector<1x128xi32>
    %14 = arith.cmpi slt, %12, %13 : vector<1x128xi32>
    %cst_10 = arith.constant 5.000000e-01 : f32
    %cst_11 = arith.constant 1.000000e+00 : f32
    %15 = vector.broadcast %cst_10 : f32 to vector<1x128xf32>
    %16 = vector.broadcast %cst_11 : f32 to vector<1x128xf32>
    %17 = arith.select %14, %15, %16 : vector<1x128xi1>, vector<1x128xf32>
    %c0_12 = arith.constant 0 : index
    %c0_13 = arith.constant 0 : index
    %18 = vector.load %arg7[%c0_12, %c0_13] : memref<8x128xf32, #tpu.memory_space<vmem>>, vector<8x128xf32>
    %c0_14 = arith.constant 0 : index
    %c0_15 = arith.constant 0 : index
    %19 = vector.load %arg8[%c0_14, %c0_15] : memref<8x32xf32, #tpu.memory_space<vmem>>, vector<8x32xf32>
    %c0_i32_16 = arith.constant 0 : i32
    %c8_i32 = arith.constant 8 : i32
    %20 = arith.muli %c0_i32_16, %c8_i32 : i32
    %21 = tpu.assume_multiple %20, 8 : i32
    %22 = arith.index_cast %21 : i32 to index
    %c0_17 = arith.constant 0 : index
    %23 = vector.load %arg6[%22, %c0_17] : memref<64x128xf32, #tpu.memory_space<vmem>>, vector<8x128xf32>
    %24 = arith.truncf %18 : vector<8x128xf32> to vector<8x128xbf16>
    %cst_18 = arith.constant dense<0.000000e+00> : vector<8x128xf32>
    %25 = tpu.matmul %24, %11, %cst_18 {dimension_numbers = #tpu.dot_dimension_numbers<[1], [0], [0], [1], [0, 0, 1, 1], [], []>} : vector<8x128xbf16>, vector<128x128xbf16>, vector<8x128xf32> -> vector<8x128xf32>
    %26 = arith.addf %23, %25 : vector<8x128xf32>
    %27 = vector.broadcast %17 : vector<1x128xf32> to vector<8x128xf32>
    %28 = arith.mulf %26, %27 : vector<8x128xf32>
    %29 = math.tanh %28 : vector<8x128xf32>
    %30 = vector.extract_strided_slice %29 {offsets = [0, 0], sizes = [8, 32], strides = [1, 1]} : vector<8x128xf32> to vector<8x32xf32>
    %cst_19 = arith.constant 1.000000e+00 : f32
    %31 = vector.broadcast %cst_19 : f32 to vector<8x32xf32>
    %32 = arith.addf %30, %31 : vector<8x32xf32>
    %cst_20 = arith.constant 5.000000e-01 : f32
    %33 = vector.broadcast %cst_20 : f32 to vector<8x32xf32>
    %34 = arith.mulf %33, %32 : vector<8x32xf32>
    %35 = vector.extract_strided_slice %29 {offsets = [0, 32], sizes = [8, 32], strides = [1, 1]} : vector<8x128xf32> to vector<8x32xf32>
    %cst_21 = arith.constant 1.000000e+00 : f32
    %36 = vector.broadcast %cst_21 : f32 to vector<8x32xf32>
    %37 = arith.addf %35, %36 : vector<8x32xf32>
    %cst_22 = arith.constant 5.000000e-01 : f32
    %38 = vector.broadcast %cst_22 : f32 to vector<8x32xf32>
    %39 = arith.mulf %38, %37 : vector<8x32xf32>
    %40 = vector.extract_strided_slice %29 {offsets = [0, 64], sizes = [8, 32], strides = [1, 1]} : vector<8x128xf32> to vector<8x32xf32>
    %cst_23 = arith.constant 1.000000e+00 : f32
    %41 = vector.broadcast %cst_23 : f32 to vector<8x32xf32>
    %42 = arith.addf %40, %41 : vector<8x32xf32>
    %cst_24 = arith.constant 5.000000e-01 : f32
    %43 = vector.broadcast %cst_24 : f32 to vector<8x32xf32>
    %44 = arith.mulf %43, %42 : vector<8x32xf32>
    %45 = vector.extract_strided_slice %29 {offsets = [0, 96], sizes = [8, 32], strides = [1, 1]} : vector<8x128xf32> to vector<8x32xf32>
    %46 = arith.mulf %39, %45 : vector<8x32xf32>
    %47 = arith.mulf %34, %19 : vector<8x32xf32>
    %48 = arith.addf %46, %47 : vector<8x32xf32>
    %49 = math.tanh %48 : vector<8x32xf32>
    %50 = arith.mulf %44, %49 : vector<8x32xf32>
    %cst_25 = arith.constant 0.000000e+00 : f32
    %51 = vector.broadcast %cst_25 : f32 to vector<8x96xf32>
    %52 = tpu.concatenate %50, %51 in 1 : vector<8x32xf32>, vector<8x96xf32> -> vector<8x128xf32>
    %53 = arith.index_cast %c0_i32_16 : i32 to index
    %c0_26 = arith.constant 0 : index
    %c0_27 = arith.constant 0 : index
    %54 = vector.load %arg5[%53, %c0_26, %c0_27] : memref<8x8x128xf32, #tpu.memory_space<vmem>>, vector<1x8x128xf32>
    %55 = vector.shape_cast %54 : vector<1x8x128xf32> to vector<8x128xf32>
    %56 = vector.shape_cast %52 : vector<8x128xf32> to vector<1x8x128xf32>
    tpu.vector_store %arg5[%53, %c0_26, %c0_27], %56 {strides = array<i32>} : memref<8x8x128xf32, #tpu.memory_space<vmem>>, vector<1x8x128xf32>,
    %c1_i32 = arith.constant 1 : i32
    %c8_i32_28 = arith.constant 8 : i32
    %57 = arith.muli %c1_i32, %c8_i32_28 : i32
    %58 = tpu.assume_multiple %57, 8 : i32
    %59 = arith.index_cast %58 : i32 to index
    %c0_29 = arith.constant 0 : index
    %60 = vector.load %arg6[%59, %c0_29] : memref<64x128xf32, #tpu.memory_space<vmem>>, vector<8x128xf32>
    %61 = arith.truncf %52 : vector<8x128xf32> to vector<8x128xbf16>
    %cst_30 = arith.constant dense<0.000000e+00> : vector<8x128xf32>
    %62 = tpu.matmul %61, %11, %cst_30 {dimension_numbers = #tpu.dot_dimension_numbers<[1], [0], [0], [1], [0, 0, 1, 1], [], []>} : vector<8x128xbf16>, vector<128x128xbf16>, vector<8x128xf32> -> vector<8x128xf32>
    %63 = arith.addf %60, %62 : vector<8x128xf32>
    %64 = vector.broadcast %17 : vector<1x128xf32> to vector<8x128xf32>
    %65 = arith.mulf %63, %64 : vector<8x128xf32>
    %66 = math.tanh %65 : vector<8x128xf32>
    %67 = vector.extract_strided_slice %66 {offsets = [0, 0], sizes = [8, 32], strides = [1, 1]} : vector<8x128xf32> to vector<8x32xf32>
    %cst_31 = arith.constant 1.000000e+00 : f32
    %68 = vector.broadcast %cst_31 : f32 to vector<8x32xf32>
    %69 = arith.addf %67, %68 : vector<8x32xf32>
    %cst_32 = arith.constant 5.000000e-01 : f32
    %70 = vector.broadcast %cst_32 : f32 to vector<8x32xf32>
    %71 = arith.mulf %70, %69 : vector<8x32xf32>
    %72 = vector.extract_strided_slice %66 {offsets = [0, 32], sizes = [8, 32], strides = [1, 1]} : vector<8x128xf32> to vector<8x32xf32>
    %cst_33 = arith.constant 1.000000e+00 : f32
    %73 = vector.broadcast %cst_33 : f32 to vector<8x32xf32>
    %74 = arith.addf %72, %73 : vector<8x32xf32>
    %cst_34 = arith.constant 5.000000e-01 : f32
    %75 = vector.broadcast %cst_34 : f32 to vector<8x32xf32>
    %76 = arith.mulf %75, %74 : vector<8x32xf32>
    %77 = vector.extract_strided_slice %66 {offsets = [0, 64], sizes = [8, 32], strides = [1, 1]} : vector<8x128xf32> to vector<8x32xf32>
    %cst_35 = arith.constant 1.000000e+00 : f32
    %78 = vector.broadcast %cst_35 : f32 to vector<8x32xf32>
    %79 = arith.addf %77, %78 : vector<8x32xf32>
    %cst_36 = arith.constant 5.000000e-01 : f32
    %80 = vector.broadcast %cst_36 : f32 to vector<8x32xf32>
    %81 = arith.mulf %80, %79 : vector<8x32xf32>
    %82 = vector.extract_strided_slice %66 {offsets = [0, 96], sizes = [8, 32], strides = [1, 1]} : vector<8x128xf32> to vector<8x32xf32>
    %83 = arith.mulf %76, %82 : vector<8x32xf32>
    %84 = arith.mulf %71, %48 : vector<8x32xf32>
    %85 = arith.addf %83, %84 : vector<8x32xf32>
    %86 = math.tanh %85 : vector<8x32xf32>
    %87 = arith.mulf %81, %86 : vector<8x32xf32>
    %cst_37 = arith.constant 0.000000e+00 : f32
    %88 = vector.broadcast %cst_37 : f32 to vector<8x96xf32>
    %89 = tpu.concatenate %87, %88 in 1 : vector<8x32xf32>, vector<8x96xf32> -> vector<8x128xf32>
    %90 = arith.index_cast %c1_i32 : i32 to index
    %c0_38 = arith.constant 0 : index
    %c0_39 = arith.constant 0 : index
    %91 = vector.load %arg5[%90, %c0_38, %c0_39] : memref<8x8x128xf32, #tpu.memory_space<vmem>>, vector<1x8x128xf32>
    %92 = vector.shape_cast %91 : vector<1x8x128xf32> to vector<8x128xf32>
    %93 = vector.shape_cast %89 : vector<8x128xf32> to vector<1x8x128xf32>
    tpu.vector_store %arg5[%90, %c0_38, %c0_39], %93 {strides = array<i32>} : memref<8x8x128xf32, #tpu.memory_space<vmem>>, vector<1x8x128xf32>,
    %c2_i32 = arith.constant 2 : i32
    %c8_i32_40 = arith.constant 8 : i32
    %94 = arith.muli %c2_i32, %c8_i32_40 : i32
    %95 = tpu.assume_multiple %94, 8 : i32
    %96 = arith.index_cast %95 : i32 to index
    %c0_41 = arith.constant 0 : index
    %97 = vector.load %arg6[%96, %c0_41] : memref<64x128xf32, #tpu.memory_space<vmem>>, vector<8x128xf32>
    %98 = arith.truncf %89 : vector<8x128xf32> to vector<8x128xbf16>
    %cst_42 = arith.constant dense<0.000000e+00> : vector<8x128xf32>
    %99 = tpu.matmul %98, %11, %cst_42 {dimension_numbers = #tpu.dot_dimension_numbers<[1], [0], [0], [1], [0, 0, 1, 1], [], []>} : vector<8x128xbf16>, vector<128x128xbf16>, vector<8x128xf32> -> vector<8x128xf32>
    %100 = arith.addf %97, %99 : vector<8x128xf32>
    %101 = vector.broadcast %17 : vector<1x128xf32> to vector<8x128xf32>
    %102 = arith.mulf %100, %101 : vector<8x128xf32>
    %103 = math.tanh %102 : vector<8x128xf32>
    %104 = vector.extract_strided_slice %103 {offsets = [0, 0], sizes = [8, 32], strides = [1, 1]} : vector<8x128xf32> to vector<8x32xf32>
    %cst_43 = arith.constant 1.000000e+00 : f32
    %105 = vector.broadcast %cst_43 : f32 to vector<8x32xf32>
    %106 = arith.addf %104, %105 : vector<8x32xf32>
    %cst_44 = arith.constant 5.000000e-01 : f32
    %107 = vector.broadcast %cst_44 : f32 to vector<8x32xf32>
    %108 = arith.mulf %107, %106 : vector<8x32xf32>
    %109 = vector.extract_strided_slice %103 {offsets = [0, 32], sizes = [8, 32], strides = [1, 1]} : vector<8x128xf32> to vector<8x32xf32>
    %cst_45 = arith.constant 1.000000e+00 : f32
    %110 = vector.broadcast %cst_45 : f32 to vector<8x32xf32>
    %111 = arith.addf %109, %110 : vector<8x32xf32>
    %cst_46 = arith.constant 5.000000e-01 : f32
    %112 = vector.broadcast %cst_46 : f32 to vector<8x32xf32>
    %113 = arith.mulf %112, %111 : vector<8x32xf32>
    %114 = vector.extract_strided_slice %103 {offsets = [0, 64], sizes = [8, 32], strides = [1, 1]} : vector<8x128xf32> to vector<8x32xf32>
    %cst_47 = arith.constant 1.000000e+00 : f32
    %115 = vector.broadcast %cst_47 : f32 to vector<8x32xf32>
    %116 = arith.addf %114, %115 : vector<8x32xf32>
    %cst_48 = arith.constant 5.000000e-01 : f32
    %117 = vector.broadcast %cst_48 : f32 to vector<8x32xf32>
    %118 = arith.mulf %117, %116 : vector<8x32xf32>
    %119 = vector.extract_strided_slice %103 {offsets = [0, 96], sizes = [8, 32], strides = [1, 1]} : vector<8x128xf32> to vector<8x32xf32>
    %120 = arith.mulf %113, %119 : vector<8x32xf32>
    %121 = arith.mulf %108, %85 : vector<8x32xf32>
    %122 = arith.addf %120, %121 : vector<8x32xf32>
    %123 = math.tanh %122 : vector<8x32xf32>
    %124 = arith.mulf %118, %123 : vector<8x32xf32>
    %cst_49 = arith.constant 0.000000e+00 : f32
    %125 = vector.broadcast %cst_49 : f32 to vector<8x96xf32>
    %126 = tpu.concatenate %124, %125 in 1 : vector<8x32xf32>, vector<8x96xf32> -> vector<8x128xf32>
    %127 = arith.index_cast %c2_i32 : i32 to index
    %c0_50 = arith.constant 0 : index
    %c0_51 = arith.constant 0 : index
    %128 = vector.load %arg5[%127, %c0_50, %c0_51] : memref<8x8x128xf32, #tpu.memory_space<vmem>>, vector<1x8x128xf32>
    %129 = vector.shape_cast %128 : vector<1x8x128xf32> to vector<8x128xf32>
    %130 = vector.shape_cast %126 : vector<8x128xf32> to vector<1x8x128xf32>
    tpu.vector_store %arg5[%127, %c0_50, %c0_51], %130 {strides = array<i32>} : memref<8x8x128xf32, #tpu.memory_space<vmem>>, vector<1x8x128xf32>,
    %c3_i32 = arith.constant 3 : i32
    %c8_i32_52 = arith.constant 8 : i32
    %131 = arith.muli %c3_i32, %c8_i32_52 : i32
    %132 = tpu.assume_multiple %131, 8 : i32
    %133 = arith.index_cast %132 : i32 to index
    %c0_53 = arith.constant 0 : index
    %134 = vector.load %arg6[%133, %c0_53] : memref<64x128xf32, #tpu.memory_space<vmem>>, vector<8x128xf32>
    %135 = arith.truncf %126 : vector<8x128xf32> to vector<8x128xbf16>
    %cst_54 = arith.constant dense<0.000000e+00> : vector<8x128xf32>
    %136 = tpu.matmul %135, %11, %cst_54 {dimension_numbers = #tpu.dot_dimension_numbers<[1], [0], [0], [1], [0, 0, 1, 1], [], []>} : vector<8x128xbf16>, vector<128x128xbf16>, vector<8x128xf32> -> vector<8x128xf32>
    %137 = arith.addf %134, %136 : vector<8x128xf32>
    %138 = vector.broadcast %17 : vector<1x128xf32> to vector<8x128xf32>
    %139 = arith.mulf %137, %138 : vector<8x128xf32>
    %140 = math.tanh %139 : vector<8x128xf32>
    %141 = vector.extract_strided_slice %140 {offsets = [0, 0], sizes = [8, 32], strides = [1, 1]} : vector<8x128xf32> to vector<8x32xf32>
    %cst_55 = arith.constant 1.000000e+00 : f32
    %142 = vector.broadcast %cst_55 : f32 to vector<8x32xf32>
    %143 = arith.addf %141, %142 : vector<8x32xf32>
    %cst_56 = arith.constant 5.000000e-01 : f32
    %144 = vector.broadcast %cst_56 : f32 to vector<8x32xf32>
    %145 = arith.mulf %144, %143 : vector<8x32xf32>
    %146 = vector.extract_strided_slice %140 {offsets = [0, 32], sizes = [8, 32], strides = [1, 1]} : vector<8x128xf32> to vector<8x32xf32>
    %cst_57 = arith.constant 1.000000e+00 : f32
    %147 = vector.broadcast %cst_57 : f32 to vector<8x32xf32>
    %148 = arith.addf %146, %147 : vector<8x32xf32>
    %cst_58 = arith.constant 5.000000e-01 : f32
    %149 = vector.broadcast %cst_58 : f32 to vector<8x32xf32>
    %150 = arith.mulf %149, %148 : vector<8x32xf32>
    %151 = vector.extract_strided_slice %140 {offsets = [0, 64], sizes = [8, 32], strides = [1, 1]} : vector<8x128xf32> to vector<8x32xf32>
    %cst_59 = arith.constant 1.000000e+00 : f32
    %152 = vector.broadcast %cst_59 : f32 to vector<8x32xf32>
    %153 = arith.addf %151, %152 : vector<8x32xf32>
    %cst_60 = arith.constant 5.000000e-01 : f32
    %154 = vector.broadcast %cst_60 : f32 to vector<8x32xf32>
    %155 = arith.mulf %154, %153 : vector<8x32xf32>
    %156 = vector.extract_strided_slice %140 {offsets = [0, 96], sizes = [8, 32], strides = [1, 1]} : vector<8x128xf32> to vector<8x32xf32>
    %157 = arith.mulf %150, %156 : vector<8x32xf32>
    %158 = arith.mulf %145, %122 : vector<8x32xf32>
    %159 = arith.addf %157, %158 : vector<8x32xf32>
    %160 = math.tanh %159 : vector<8x32xf32>
    %161 = arith.mulf %155, %160 : vector<8x32xf32>
    %cst_61 = arith.constant 0.000000e+00 : f32
    %162 = vector.broadcast %cst_61 : f32 to vector<8x96xf32>
    %163 = tpu.concatenate %161, %162 in 1 : vector<8x32xf32>, vector<8x96xf32> -> vector<8x128xf32>
    %164 = arith.index_cast %c3_i32 : i32 to index
    %c0_62 = arith.constant 0 : index
    %c0_63 = arith.constant 0 : index
    %165 = vector.load %arg5[%164, %c0_62, %c0_63] : memref<8x8x128xf32, #tpu.memory_space<vmem>>, vector<1x8x128xf32>
    %166 = vector.shape_cast %165 : vector<1x8x128xf32> to vector<8x128xf32>
    %167 = vector.shape_cast %163 : vector<8x128xf32> to vector<1x8x128xf32>
    tpu.vector_store %arg5[%164, %c0_62, %c0_63], %167 {strides = array<i32>} : memref<8x8x128xf32, #tpu.memory_space<vmem>>, vector<1x8x128xf32>,
    %c4_i32 = arith.constant 4 : i32
    %c8_i32_64 = arith.constant 8 : i32
    %168 = arith.muli %c4_i32, %c8_i32_64 : i32
    %169 = tpu.assume_multiple %168, 8 : i32
    %170 = arith.index_cast %169 : i32 to index
    %c0_65 = arith.constant 0 : index
    %171 = vector.load %arg6[%170, %c0_65] : memref<64x128xf32, #tpu.memory_space<vmem>>, vector<8x128xf32>
    %172 = arith.truncf %163 : vector<8x128xf32> to vector<8x128xbf16>
    %cst_66 = arith.constant dense<0.000000e+00> : vector<8x128xf32>
    %173 = tpu.matmul %172, %11, %cst_66 {dimension_numbers = #tpu.dot_dimension_numbers<[1], [0], [0], [1], [0, 0, 1, 1], [], []>} : vector<8x128xbf16>, vector<128x128xbf16>, vector<8x128xf32> -> vector<8x128xf32>
    %174 = arith.addf %171, %173 : vector<8x128xf32>
    %175 = vector.broadcast %17 : vector<1x128xf32> to vector<8x128xf32>
    %176 = arith.mulf %174, %175 : vector<8x128xf32>
    %177 = math.tanh %176 : vector<8x128xf32>
    %178 = vector.extract_strided_slice %177 {offsets = [0, 0], sizes = [8, 32], strides = [1, 1]} : vector<8x128xf32> to vector<8x32xf32>
    %cst_67 = arith.constant 1.000000e+00 : f32
    %179 = vector.broadcast %cst_67 : f32 to vector<8x32xf32>
    %180 = arith.addf %178, %179 : vector<8x32xf32>
    %cst_68 = arith.constant 5.000000e-01 : f32
    %181 = vector.broadcast %cst_68 : f32 to vector<8x32xf32>
    %182 = arith.mulf %181, %180 : vector<8x32xf32>
    %183 = vector.extract_strided_slice %177 {offsets = [0, 32], sizes = [8, 32], strides = [1, 1]} : vector<8x128xf32> to vector<8x32xf32>
    %cst_69 = arith.constant 1.000000e+00 : f32
    %184 = vector.broadcast %cst_69 : f32 to vector<8x32xf32>
    %185 = arith.addf %183, %184 : vector<8x32xf32>
    %cst_70 = arith.constant 5.000000e-01 : f32
    %186 = vector.broadcast %cst_70 : f32 to vector<8x32xf32>
    %187 = arith.mulf %186, %185 : vector<8x32xf32>
    %188 = vector.extract_strided_slice %177 {offsets = [0, 64], sizes = [8, 32], strides = [1, 1]} : vector<8x128xf32> to vector<8x32xf32>
    %cst_71 = arith.constant 1.000000e+00 : f32
    %189 = vector.broadcast %cst_71 : f32 to vector<8x32xf32>
    %190 = arith.addf %188, %189 : vector<8x32xf32>
    %cst_72 = arith.constant 5.000000e-01 : f32
    %191 = vector.broadcast %cst_72 : f32 to vector<8x32xf32>
    %192 = arith.mulf %191, %190 : vector<8x32xf32>
    %193 = vector.extract_strided_slice %177 {offsets = [0, 96], sizes = [8, 32], strides = [1, 1]} : vector<8x128xf32> to vector<8x32xf32>
    %194 = arith.mulf %187, %193 : vector<8x32xf32>
    %195 = arith.mulf %182, %159 : vector<8x32xf32>
    %196 = arith.addf %194, %195 : vector<8x32xf32>
    %197 = math.tanh %196 : vector<8x32xf32>
    %198 = arith.mulf %192, %197 : vector<8x32xf32>
    %cst_73 = arith.constant 0.000000e+00 : f32
    %199 = vector.broadcast %cst_73 : f32 to vector<8x96xf32>
    %200 = tpu.concatenate %198, %199 in 1 : vector<8x32xf32>, vector<8x96xf32> -> vector<8x128xf32>
    %201 = arith.index_cast %c4_i32 : i32 to index
    %c0_74 = arith.constant 0 : index
    %c0_75 = arith.constant 0 : index
    %202 = vector.load %arg5[%201, %c0_74, %c0_75] : memref<8x8x128xf32, #tpu.memory_space<vmem>>, vector<1x8x128xf32>
    %203 = vector.shape_cast %202 : vector<1x8x128xf32> to vector<8x128xf32>
    %204 = vector.shape_cast %200 : vector<8x128xf32> to vector<1x8x128xf32>
    tpu.vector_store %arg5[%201, %c0_74, %c0_75], %204 {strides = array<i32>} : memref<8x8x128xf32, #tpu.memory_space<vmem>>, vector<1x8x128xf32>,
    %c5_i32 = arith.constant 5 : i32
    %c8_i32_76 = arith.constant 8 : i32
    %205 = arith.muli %c5_i32, %c8_i32_76 : i32
    %206 = tpu.assume_multiple %205, 8 : i32
    %207 = arith.index_cast %206 : i32 to index
    %c0_77 = arith.constant 0 : index
    %208 = vector.load %arg6[%207, %c0_77] : memref<64x128xf32, #tpu.memory_space<vmem>>, vector<8x128xf32>
    %209 = arith.truncf %200 : vector<8x128xf32> to vector<8x128xbf16>
    %cst_78 = arith.constant dense<0.000000e+00> : vector<8x128xf32>
    %210 = tpu.matmul %209, %11, %cst_78 {dimension_numbers = #tpu.dot_dimension_numbers<[1], [0], [0], [1], [0, 0, 1, 1], [], []>} : vector<8x128xbf16>, vector<128x128xbf16>, vector<8x128xf32> -> vector<8x128xf32>
    %211 = arith.addf %208, %210 : vector<8x128xf32>
    %212 = vector.broadcast %17 : vector<1x128xf32> to vector<8x128xf32>
    %213 = arith.mulf %211, %212 : vector<8x128xf32>
    %214 = math.tanh %213 : vector<8x128xf32>
    %215 = vector.extract_strided_slice %214 {offsets = [0, 0], sizes = [8, 32], strides = [1, 1]} : vector<8x128xf32> to vector<8x32xf32>
    %cst_79 = arith.constant 1.000000e+00 : f32
    %216 = vector.broadcast %cst_79 : f32 to vector<8x32xf32>
    %217 = arith.addf %215, %216 : vector<8x32xf32>
    %cst_80 = arith.constant 5.000000e-01 : f32
    %218 = vector.broadcast %cst_80 : f32 to vector<8x32xf32>
    %219 = arith.mulf %218, %217 : vector<8x32xf32>
    %220 = vector.extract_strided_slice %214 {offsets = [0, 32], sizes = [8, 32], strides = [1, 1]} : vector<8x128xf32> to vector<8x32xf32>
    %cst_81 = arith.constant 1.000000e+00 : f32
    %221 = vector.broadcast %cst_81 : f32 to vector<8x32xf32>
    %222 = arith.addf %220, %221 : vector<8x32xf32>
    %cst_82 = arith.constant 5.000000e-01 : f32
    %223 = vector.broadcast %cst_82 : f32 to vector<8x32xf32>
    %224 = arith.mulf %223, %222 : vector<8x32xf32>
    %225 = vector.extract_strided_slice %214 {offsets = [0, 64], sizes = [8, 32], strides = [1, 1]} : vector<8x128xf32> to vector<8x32xf32>
    %cst_83 = arith.constant 1.000000e+00 : f32
    %226 = vector.broadcast %cst_83 : f32 to vector<8x32xf32>
    %227 = arith.addf %225, %226 : vector<8x32xf32>
    %cst_84 = arith.constant 5.000000e-01 : f32
    %228 = vector.broadcast %cst_84 : f32 to vector<8x32xf32>
    %229 = arith.mulf %228, %227 : vector<8x32xf32>
    %230 = vector.extract_strided_slice %214 {offsets = [0, 96], sizes = [8, 32], strides = [1, 1]} : vector<8x128xf32> to vector<8x32xf32>
    %231 = arith.mulf %224, %230 : vector<8x32xf32>
    %232 = arith.mulf %219, %196 : vector<8x32xf32>
    %233 = arith.addf %231, %232 : vector<8x32xf32>
    %234 = math.tanh %233 : vector<8x32xf32>
    %235 = arith.mulf %229, %234 : vector<8x32xf32>
    %cst_85 = arith.constant 0.000000e+00 : f32
    %236 = vector.broadcast %cst_85 : f32 to vector<8x96xf32>
    %237 = tpu.concatenate %235, %236 in 1 : vector<8x32xf32>, vector<8x96xf32> -> vector<8x128xf32>
    %238 = arith.index_cast %c5_i32 : i32 to index
    %c0_86 = arith.constant 0 : index
    %c0_87 = arith.constant 0 : index
    %239 = vector.load %arg5[%238, %c0_86, %c0_87] : memref<8x8x128xf32, #tpu.memory_space<vmem>>, vector<1x8x128xf32>
    %240 = vector.shape_cast %239 : vector<1x8x128xf32> to vector<8x128xf32>
    %241 = vector.shape_cast %237 : vector<8x128xf32> to vector<1x8x128xf32>
    tpu.vector_store %arg5[%238, %c0_86, %c0_87], %241 {strides = array<i32>} : memref<8x8x128xf32, #tpu.memory_space<vmem>>, vector<1x8x128xf32>,
    %c6_i32 = arith.constant 6 : i32
    %c8_i32_88 = arith.constant 8 : i32
    %242 = arith.muli %c6_i32, %c8_i32_88 : i32
    %243 = tpu.assume_multiple %242, 8 : i32
    %244 = arith.index_cast %243 : i32 to index
    %c0_89 = arith.constant 0 : index
    %245 = vector.load %arg6[%244, %c0_89] : memref<64x128xf32, #tpu.memory_space<vmem>>, vector<8x128xf32>
    %246 = arith.truncf %237 : vector<8x128xf32> to vector<8x128xbf16>
    %cst_90 = arith.constant dense<0.000000e+00> : vector<8x128xf32>
    %247 = tpu.matmul %246, %11, %cst_90 {dimension_numbers = #tpu.dot_dimension_numbers<[1], [0], [0], [1], [0, 0, 1, 1], [], []>} : vector<8x128xbf16>, vector<128x128xbf16>, vector<8x128xf32> -> vector<8x128xf32>
    %248 = arith.addf %245, %247 : vector<8x128xf32>
    %249 = vector.broadcast %17 : vector<1x128xf32> to vector<8x128xf32>
    %250 = arith.mulf %248, %249 : vector<8x128xf32>
    %251 = math.tanh %250 : vector<8x128xf32>
    %252 = vector.extract_strided_slice %251 {offsets = [0, 0], sizes = [8, 32], strides = [1, 1]} : vector<8x128xf32> to vector<8x32xf32>
    %cst_91 = arith.constant 1.000000e+00 : f32
    %253 = vector.broadcast %cst_91 : f32 to vector<8x32xf32>
    %254 = arith.addf %252, %253 : vector<8x32xf32>
    %cst_92 = arith.constant 5.000000e-01 : f32
    %255 = vector.broadcast %cst_92 : f32 to vector<8x32xf32>
    %256 = arith.mulf %255, %254 : vector<8x32xf32>
    %257 = vector.extract_strided_slice %251 {offsets = [0, 32], sizes = [8, 32], strides = [1, 1]} : vector<8x128xf32> to vector<8x32xf32>
    %cst_93 = arith.constant 1.000000e+00 : f32
    %258 = vector.broadcast %cst_93 : f32 to vector<8x32xf32>
    %259 = arith.addf %257, %258 : vector<8x32xf32>
    %cst_94 = arith.constant 5.000000e-01 : f32
    %260 = vector.broadcast %cst_94 : f32 to vector<8x32xf32>
    %261 = arith.mulf %260, %259 : vector<8x32xf32>
    %262 = vector.extract_strided_slice %251 {offsets = [0, 64], sizes = [8, 32], strides = [1, 1]} : vector<8x128xf32> to vector<8x32xf32>
    %cst_95 = arith.constant 1.000000e+00 : f32
    %263 = vector.broadcast %cst_95 : f32 to vector<8x32xf32>
    %264 = arith.addf %262, %263 : vector<8x32xf32>
    %cst_96 = arith.constant 5.000000e-01 : f32
    %265 = vector.broadcast %cst_96 : f32 to vector<8x32xf32>
    %266 = arith.mulf %265, %264 : vector<8x32xf32>
    %267 = vector.extract_strided_slice %251 {offsets = [0, 96], sizes = [8, 32], strides = [1, 1]} : vector<8x128xf32> to vector<8x32xf32>
    %268 = arith.mulf %261, %267 : vector<8x32xf32>
    %269 = arith.mulf %256, %233 : vector<8x32xf32>
    %270 = arith.addf %268, %269 : vector<8x32xf32>
    %271 = math.tanh %270 : vector<8x32xf32>
    %272 = arith.mulf %266, %271 : vector<8x32xf32>
    %cst_97 = arith.constant 0.000000e+00 : f32
    %273 = vector.broadcast %cst_97 : f32 to vector<8x96xf32>
    %274 = tpu.concatenate %272, %273 in 1 : vector<8x32xf32>, vector<8x96xf32> -> vector<8x128xf32>
    %275 = arith.index_cast %c6_i32 : i32 to index
    %c0_98 = arith.constant 0 : index
    %c0_99 = arith.constant 0 : index
    %276 = vector.load %arg5[%275, %c0_98, %c0_99] : memref<8x8x128xf32, #tpu.memory_space<vmem>>, vector<1x8x128xf32>
    %277 = vector.shape_cast %276 : vector<1x8x128xf32> to vector<8x128xf32>
    %278 = vector.shape_cast %274 : vector<8x128xf32> to vector<1x8x128xf32>
    tpu.vector_store %arg5[%275, %c0_98, %c0_99], %278 {strides = array<i32>} : memref<8x8x128xf32, #tpu.memory_space<vmem>>, vector<1x8x128xf32>,
    %c7_i32 = arith.constant 7 : i32
    %c8_i32_100 = arith.constant 8 : i32
    %279 = arith.muli %c7_i32, %c8_i32_100 : i32
    %280 = tpu.assume_multiple %279, 8 : i32
    %281 = arith.index_cast %280 : i32 to index
    %c0_101 = arith.constant 0 : index
    %282 = vector.load %arg6[%281, %c0_101] : memref<64x128xf32, #tpu.memory_space<vmem>>, vector<8x128xf32>
    %283 = arith.truncf %274 : vector<8x128xf32> to vector<8x128xbf16>
    %cst_102 = arith.constant dense<0.000000e+00> : vector<8x128xf32>
    %284 = tpu.matmul %283, %11, %cst_102 {dimension_numbers = #tpu.dot_dimension_numbers<[1], [0], [0], [1], [0, 0, 1, 1], [], []>} : vector<8x128xbf16>, vector<128x128xbf16>, vector<8x128xf32> -> vector<8x128xf32>
    %285 = arith.addf %282, %284 : vector<8x128xf32>
    %286 = vector.broadcast %17 : vector<1x128xf32> to vector<8x128xf32>
    %287 = arith.mulf %285, %286 : vector<8x128xf32>
    %288 = math.tanh %287 : vector<8x128xf32>
    %289 = vector.extract_strided_slice %288 {offsets = [0, 0], sizes = [8, 32], strides = [1, 1]} : vector<8x128xf32> to vector<8x32xf32>
    %cst_103 = arith.constant 1.000000e+00 : f32
    %290 = vector.broadcast %cst_103 : f32 to vector<8x32xf32>
    %291 = arith.addf %289, %290 : vector<8x32xf32>
    %cst_104 = arith.constant 5.000000e-01 : f32
    %292 = vector.broadcast %cst_104 : f32 to vector<8x32xf32>
    %293 = arith.mulf %292, %291 : vector<8x32xf32>
    %294 = vector.extract_strided_slice %288 {offsets = [0, 32], sizes = [8, 32], strides = [1, 1]} : vector<8x128xf32> to vector<8x32xf32>
    %cst_105 = arith.constant 1.000000e+00 : f32
    %295 = vector.broadcast %cst_105 : f32 to vector<8x32xf32>
    %296 = arith.addf %294, %295 : vector<8x32xf32>
    %cst_106 = arith.constant 5.000000e-01 : f32
    %297 = vector.broadcast %cst_106 : f32 to vector<8x32xf32>
    %298 = arith.mulf %297, %296 : vector<8x32xf32>
    %299 = vector.extract_strided_slice %288 {offsets = [0, 64], sizes = [8, 32], strides = [1, 1]} : vector<8x128xf32> to vector<8x32xf32>
    %cst_107 = arith.constant 1.000000e+00 : f32
    %300 = vector.broadcast %cst_107 : f32 to vector<8x32xf32>
    %301 = arith.addf %299, %300 : vector<8x32xf32>
    %cst_108 = arith.constant 5.000000e-01 : f32
    %302 = vector.broadcast %cst_108 : f32 to vector<8x32xf32>
    %303 = arith.mulf %302, %301 : vector<8x32xf32>
    %304 = vector.extract_strided_slice %288 {offsets = [0, 96], sizes = [8, 32], strides = [1, 1]} : vector<8x128xf32> to vector<8x32xf32>
    %305 = arith.mulf %298, %304 : vector<8x32xf32>
    %306 = arith.mulf %293, %270 : vector<8x32xf32>
    %307 = arith.addf %305, %306 : vector<8x32xf32>
    %308 = math.tanh %307 : vector<8x32xf32>
    %309 = arith.mulf %303, %308 : vector<8x32xf32>
    %cst_109 = arith.constant 0.000000e+00 : f32
    %310 = vector.broadcast %cst_109 : f32 to vector<8x96xf32>
    %311 = tpu.concatenate %309, %310 in 1 : vector<8x32xf32>, vector<8x96xf32> -> vector<8x128xf32>
    %312 = arith.index_cast %c7_i32 : i32 to index
    %c0_110 = arith.constant 0 : index
    %c0_111 = arith.constant 0 : index
    %313 = vector.load %arg5[%312, %c0_110, %c0_111] : memref<8x8x128xf32, #tpu.memory_space<vmem>>, vector<1x8x128xf32>
    %314 = vector.shape_cast %313 : vector<1x8x128xf32> to vector<8x128xf32>
    %315 = vector.shape_cast %311 : vector<8x128xf32> to vector<1x8x128xf32>
    tpu.vector_store %arg5[%312, %c0_110, %c0_111], %315 {strides = array<i32>} : memref<8x8x128xf32, #tpu.memory_space<vmem>>, vector<1x8x128xf32>,
    %c8_i32_112 = arith.constant 8 : i32
    %c0_113 = arith.constant 0 : index
    %c0_114 = arith.constant 0 : index
    %316 = vector.load %arg7[%c0_113, %c0_114] : memref<8x128xf32, #tpu.memory_space<vmem>>, vector<8x128xf32>
    tpu.vector_store %arg7[%c0_113, %c0_114], %311 {strides = array<i32>} : memref<8x128xf32, #tpu.memory_space<vmem>>, vector<8x128xf32>,
    %c0_115 = arith.constant 0 : index
    %c0_116 = arith.constant 0 : index
    %317 = vector.load %arg8[%c0_115, %c0_116] : memref<8x32xf32, #tpu.memory_space<vmem>>, vector<8x32xf32>
    tpu.vector_store %arg8[%c0_115, %c0_116], %307 {strides = array<i32>} : memref<8x32xf32, #tpu.memory_space<vmem>>, vector<8x32xf32>,
    return
  }
  func.func @transform_0(%arg0: i32) -> (i32, i32) {
    %c0_i32 = arith.constant 0 : i32
    %c0_i32_0 = arith.constant 0 : i32
    return %arg0, %c0_i32 : i32, i32
  }
  func.func @transform_1(%arg0: i32) -> (i32, i32) {
    %c0_i32 = arith.constant 0 : i32
    %c0_i32_0 = arith.constant 0 : i32
    %c0_i32_1 = arith.constant 0 : i32
    return %c0_i32, %c0_i32_0 : i32, i32
  }
  func.func @transform_2(%arg0: i32) -> (i32, i32) {
    %c0_i32 = arith.constant 0 : i32
    %c0_i32_0 = arith.constant 0 : i32
    %c0_i32_1 = arith.constant 0 : i32
    return %c0_i32, %c0_i32_0 : i32, i32
  }
  func.func @transform_3(%arg0: i32) -> (i32, i32) {
    %c0_i32 = arith.constant 0 : i32
    %c0_i32_0 = arith.constant 0 : i32
    %c0_i32_1 = arith.constant 0 : i32
    return %c0_i32, %c0_i32_0 : i32, i32
  }
  func.func @transform_4(%arg0: i32) -> (i32, i32, i32) {
    %c0_i32 = arith.constant 0 : i32
    %c0_i32_0 = arith.constant 0 : i32
    %c0_i32_1 = arith.constant 0 : i32
    return %arg0, %c0_i32, %c0_i32_0 : i32, i32, i32
  }
}

</mosaic_0001>

<bundles_post_ra>
// kernel: bcmlstm_forward.1
= control target key start
LH: loop header
LB: loop body
LE: loop exit
PB: predicated region body
PF: predicated region fallthrough
CT: control target
= control target key end

     0   :  { %v1158_v0 = vmov 0.0   ;;  %vm1159_vm0 = vmmov 0   ;;  %vm52_vm1 = vcmask 130048   ;;  %v1160_v16 = vmov 0.0|0.0   ;;  %s1162_s15 = smov 64   ;;  %s1164_s16 = smov 96   ;;  %s1541_s3 = inlined_call_operand.vmem [shape: bf16[128,128], index: 3, kind: input, shape index: {}]   ;;  %s1542_s1 = inlined_call_operand.vmem [shape: bf16[16,128], index: 1, kind: input, shape index: {}]   ;;  %s1543_s0 = inlined_call_operand.vmem [shape: f32[64,16], index: 0, kind: input, shape index: {}]   ;;  %s1544_s2 = inlined_call_operand.vmem [shape: f32[1,128], index: 2, kind: input, shape index: {}]   ;;  %s1545_s4 = inlined_call_operand.vmem [shape: f32[8,8,128], index: 4, kind: output, shape index: {}]  }
   0x1   :  { %950 = vmatprep.subr.bf16.mxu1 %v1158_v0  ;;  %v1194_v1 = vld [vmem:[%s1541_s3 + $0x38] sm:$0xff]   ;;  %966 = vmatprep.mubr.msk.bf16.mxu1 %vm1159_vm0, %v1158_v0  ;;  %v1202_v2 = vld [vmem:[%s1541_s3 + $0x30] sm:$0xff]   ;;  %v1208_v3 = vld [vmem:[%s1541_s3 + $0x28] sm:$0xff]   ;;  %vm23_vm2 = vcmask 261120   ;;  %v154_v17 = vlaneseq  ;;  %v1161_v23 = vmov 1.0  }
   0x2   :  { %951 = vmatpush3.bf16.msra.mxu1 %v1194_v1  ;;  %v1122_v4 = vld [vmem:[%s1542_s1] sm:$0xff]   ;;  %v26_v6 = vld [vmem:[%s1543_s0 + $0x8] sm:$0xff]  ;;  %v27_v8 = vld [vmem:[%s1543_s0 + $0x10] sm:$0xff]  ;;  %24 = vst.msk [vmem:[#allocation4] sm:$0xff] %vm23_vm2, %v1158_v0 }
   0x3   :  { %952 = vmatprep.subr.bf16.mxu1 %v1158_v0  ;;  %v25_v5 = vld [vmem:[%s1543_s0] sm:$0xff]  ;;  %940 = vmatprep.subr.bf16.mxu0 %v1122_v4  ;;  %v28_v9 = vld [vmem:[%s1543_s0 + $0x18] sm:$0xff]  ;;  %v1252_v13 = vld [vmem:[%s1541_s3 + $0x10] sm:$0xff]   ;;  %v155_v18 = vand.u32 127, %v154_v17 }
   0x4   :  { %v33_v7 = vpack.c.bf16 %v26_v6, %v25_v5  ;;  %941 = vmatpush3.bf16.msra.mxu0 %v1122_v4  ;;  %v34_v10 = vpack.c.bf16 %v28_v9, %v27_v8  ;;  %v1233_v11 = vld [vmem:[%s1541_s3 + $0x20] sm:$0xff]   ;;  %v1243_v12 = vld [vmem:[%s1541_s3 + $0x18] sm:$0xff]   ;;  %v1261_v14 = vld [vmem:[%s1541_s3 + $0x8] sm:$0xff]  }
   0x5   :  { %970 = vmatprep.subr.bf16.mxu0 %v1158_v0  ;;  %v1270_v15 = vld [vmem:[%s1541_s3] sm:$0xff]   ;;  %vm156_vm3 = vcmp.lt.s32.totalorder %v155_v18, 96  ;;  %v30_v41 = vld [vmem:[%s1543_s0 + $0x28] sm:$0xff]  ;;  %v31_v42 = vld [vmem:[%s1543_s0 + $0x30] sm:$0xff] }
   0x6   :  { %953 = vmatpush3.bf16.msra.mxu1 %v1202_v2  ;;  %942 = vmatprep.mubr.msk.bf16.mxu0 %vm52_vm1, %v33_v7  ;;  %v1308_v20 = vld [vmem:[%s1544_s2] ss:$0 sm:$0xff]  ;;  %v1311_v24 = vsel %vm156_vm3, 0.5, %v1161_v23  ;;  %s1163_s2 = smov 32   ;;  %v32_v44 = vld [vmem:[%s1543_s0 + $0x38] sm:$0xff]  ;;  %vm1337_vm4 = vmpackc.low %vm23_vm2, %vm23_vm2 }
   0x7   :  { %954 = vmatprep.subr.bf16.mxu1 %v1158_v0  ;;  %943 = vmatmul.mubr.msk.bf16.vlgmr.msra.gmra.mxu0 %vm52_vm1, %v34_v10  ;;  %v29_v40 = vld [vmem:[%s1543_s0 + $0x20] sm:$0xff]  ;;  %v36_v45 = vpack.c.bf16 %v32_v44, %v31_v42 }
   0x8   :  { %971 = vmatpush3.bf16.msra.mxu0 %v1194_v1  ;;  %v35_v43 = vpack.c.bf16 %v30_v41, %v29_v40 }
   0x9   :  { %972 = vmatprep.subr.bf16.mxu0 %v1158_v0  ;;  %v159_v33 = vld [vmem:[#allocation4] sm:$0xff] }
   0xa   :  { %955 = vmatpush3.bf16.msra.mxu1 %v1208_v3  ;;  %946 = vmatprep.mubr.msk.bf16.mxu0 %vm52_vm1, %v35_v43 }
   0xb   :  { %956 = vmatprep.subr.bf16.mxu1 %v1158_v0 }
   0xc   :  { %973 = vmatpush3.bf16.msra.mxu0 %v1202_v2 }
   0xd   :  { %974 = vmatprep.subr.bf16.mxu0 %v1158_v0 }
   0xe   :  { %957 = vmatpush3.bf16.msra.mxu1 %v1233_v11 }
   0xf   :  { %958 = vmatprep.subr.bf16.mxu1 %v1158_v0  ;;  %947 = vmatmul.mubr.msk.bf16.gmra.mxu0 %vm52_vm1, %v36_v45 }
  0x10   :  { %975 = vmatpush3.bf16.msra.mxu0 %v1208_v3  ;;  %986 = vmatprep.mubr.msk.bf16.mxu0 %vm1159_vm0, %v1158_v0 }
  0x11   :  { %976 = vmatprep.subr.bf16.mxu0 %v1158_v0 }
  0x12   :  { %959 = vmatpush3.bf16.msra.mxu1 %v1243_v12 }
  0x13   :  { %960 = vmatprep.subr.bf16.mxu1 %v1158_v0 }
  0x14   :  { %977 = vmatpush3.bf16.msra.mxu0 %v1233_v11 }
  0x15   :  { %978 = vmatprep.subr.bf16.mxu0 %v1158_v0 }
  0x16   :  { %961 = vmatpush3.bf16.msra.mxu1 %v1252_v13 }
  0x17   :  { %962 = vmatprep.subr.bf16.mxu1 %v1158_v0 }
  0x18   :  { %979 = vmatpush3.bf16.msra.mxu0 %v1243_v12 }
  0x19   :  { %980 = vmatprep.subr.bf16.mxu0 %v1158_v0 }
  0x1a   :  { %963 = vmatpush3.bf16.msra.mxu1 %v1261_v14 }
  0x1b   :  { %964 = vmatprep.subr.bf16.mxu1 %v1158_v0 }
  0x1c   :  { %981 = vmatpush3.bf16.msra.mxu0 %v1252_v13 }
  0x1d   :  { %982 = vmatprep.subr.bf16.mxu0 %v1158_v0 }
  0x1e   :  { %965 = vmatpush3.bf16.msra.mxu1 %v1270_v15 }
  0x1f   :  { %990 = vmatprep.subr.bf16.mxu1 %v1158_v0 }
  0x20   :  { %983 = vmatpush3.bf16.msra.mxu0 %v1261_v14 }
  0x21   :  { %967 = vmatmul.mubr.bf16.vlgmr.msra.gmra.mxu1 %v1160_v16  ;;  %984 = vmatprep.subr.bf16.mxu0 %v1158_v0 }
  0x22   :  { %991 = vmatpush3.bf16.msra.mxu1 %v1194_v1  ;;  %1006 = vmatprep.mubr.msk.bf16.mxu1 %vm1159_vm0, %v1158_v0 }
  0x23   :  { %992 = vmatprep.subr.bf16.mxu1 %v1158_v0 }
  0x24   :  { %985 = vmatpush3.bf16.msra.mxu0 %v1270_v15 }
  0x25   :  { %1010 = vmatprep.subr.bf16.mxu0 %v1158_v0 }
  0x26   :  { %993 = vmatpush3.bf16.msra.mxu1 %v1202_v2 }
  0x27   :  { %994 = vmatprep.subr.bf16.mxu1 %v1158_v0 }
  0x2a   :  { %995 = vmatpush3.bf16.msra.mxu1 %v1208_v3 }
  0x2b   :  { %996 = vmatprep.subr.bf16.mxu1 %v1158_v0 }
  0x2e   :  { %997 = vmatpush3.bf16.msra.mxu1 %v1233_v11 }
  0x2f   :  { %998 = vmatprep.subr.bf16.mxu1 %v1158_v0 }
  0x32   :  { %999 = vmatpush3.bf16.msra.mxu1 %v1243_v12 }
  0x33   :  { %1000 = vmatprep.subr.bf16.mxu1 %v1158_v0 }
  0x36   :  { %1001 = vmatpush3.bf16.msra.mxu1 %v1252_v13 }
  0x37   :  { %1002 = vmatprep.subr.bf16.mxu1 %v1158_v0 }
  0x3a   :  { %1003 = vmatpush3.bf16.msra.mxu1 %v1261_v14 }
  0x3b   :  { %1004 = vmatprep.subr.bf16.mxu1 %v1158_v0 }
  0x3e   :  { %1005 = vmatpush3.bf16.msra.mxu1 %v1270_v15 }
  0x3f   :  { %1030 = vmatprep.subr.bf16.mxu1 %v1158_v0 }
  0xc7   :  { %v1303_v19 = vpop.f32.mrf.mxu0 }
  0xc9   :  { %v99_v21 = vpop.f32.mrf.mxu0 }
  0xca   :  { %v100_v22 = vadd.f32 %v1308_v20, %v99_v21 }
  0xcb   :  { %v1365_v53 = vpop.f32.mrf.mxu0 }
  0xcd   :  { %v102_v54 = vpop.f32.mrf.mxu0 }
  0xce   :  { %v103_v59 = vadd.f32 %v1308_v20, %v102_v54 }
  0xcf   :  { %v1367_v55 = vpop.f32.mrf.mxu0 }
  0xd1   :  { %v1369_v56 = vpop.f32.mrf.mxu0 }
  0xd3   :  { %v1371_v57 = vpop.f32.mrf.mxu0 }
  0xd5   :  { %v1373_v58 = vpop.f32.mrf.mxu0 }
  0xe1   :  { %v244_v25 = vpop.f32.mrf.mxu1 }
  0xe2   :  { %v250_v26 = vadd.f32 %v244_v25, %v100_v22 }
  0xe3   :  { %v968_v27 = vpop.f32.mrf.mxu1 }
  0xe4   :  { %v251_v28 = vmul.f32 %v250_v26, %v1311_v24 }
  0xe5   :  { %v247_v29 = vpop.f32.mrf.mxu1 }
  0xe6   :  { %1126 = vtanh.f32 %v251_v28  ;;  %v108_v29 = vadd.f32 %v1303_v19, %v1308_v20 }
  0xe7   :  { %v969_v30 = vpop.f32.mrf.mxu1 }
  0xf3   :  { %v1127_v31 = vpop.eup %1126 }
  0xf4   :  { %256 = vrot.lane.b32.xlu0 %v1127_v31, %s1162_s15  ;;  %v253_v32 = vadd.f32 1.0, %v1127_v31 }
  0xf6   :  { %v254_v34 = vmul.f32 0.5, %v253_v32 }
  0xf8   :  { %v260_v35 = vmul.f32 %v254_v34, %v159_v33 }
  0xfa   :  { %262 = vrot.lane.b32.xlu0 %v260_v35, %s1163_s2 }
 0x166   :  { %v257_v36 = vpop.permute.xlu0 %256 }
 0x167   :  { %v259_v37 = vmul.f32 %v257_v36, %v254_v34 }
 0x16c   :  { %v263_v38 = vpop.permute.xlu0 %262 }
 0x16d   :  { %v265_v39 = vadd.f32 %v263_v38, %v259_v37 }
 0x16f   :  { %1128 = vtanh.f32 %v265_v39  ;;  %333 = vrot.lane.b32.xlu0 %v265_v39, %s1164_s16 }
 0x17c   :  { %v1129_v46 = vpop.eup %1128 }
 0x17d   :  { %268 = vrot.lane.b32.xlu1 %v1129_v46, %s1163_s2 }
 0x1e1   :  { %v334_v9 = vpop.permute.xlu0 %333 }
 0x1ef   :  { %v269_v47 = vpop.permute.xlu1 %268 }
 0x1f0   :  { %v271_v48 = vmul.f32 %v269_v47, %v254_v34 }
 0x1f2   :  { %273 = vrot.lane.b32.xlu1 %v271_v48, %s1162_s15 }
 0x264   :  { %v274_v49 = vpop.permute.xlu1 %273 }
 0x265   :  { %v277_v51 = vsel %vm23_vm2, %v274_v49, 0.0  ;;  %v836_v52 = vpack.c.bf16 %v274_v49, %v274_v49 }
 0x266   :  { %278 = vst [vmem:[%s1545_s4] sm:$0xff] %v277_v51  ;;  %v111_v51 = vadd.f32 %v1365_v53, %v1308_v20 }
 0x267   :  { %987 = vmatmul.mubr.msk.bf16.vlgmr.msra.gmra.mxu0 %vm1337_vm4, %v836_v52 }
 0x268   :  { %1011 = vmatpush3.bf16.msra.mxu0 %v1194_v1  ;;  %1026 = vmatprep.mubr.msk.bf16.mxu0 %vm1159_vm0, %v1158_v0 }
 0x269   :  { %1012 = vmatprep.subr.bf16.mxu0 %v1158_v0 }
 0x26c   :  { %1013 = vmatpush3.bf16.msra.mxu0 %v1202_v2 }
 0x26d   :  { %1014 = vmatprep.subr.bf16.mxu0 %v1158_v0 }
 0x270   :  { %1015 = vmatpush3.bf16.msra.mxu0 %v1208_v3 }
 0x271   :  { %1016 = vmatprep.subr.bf16.mxu0 %v1158_v0 }
 0x274   :  { %1017 = vmatpush3.bf16.msra.mxu0 %v1233_v11 }
 0x275   :  { %1018 = vmatprep.subr.bf16.mxu0 %v1158_v0 }
 0x278   :  { %1019 = vmatpush3.bf16.msra.mxu0 %v1243_v12 }
 0x279   :  { %1020 = vmatprep.subr.bf16.mxu0 %v1158_v0 }
 0x27c   :  { %1021 = vmatpush3.bf16.msra.mxu0 %v1252_v13 }
 0x27d   :  { %1022 = vmatprep.subr.bf16.mxu0 %v1158_v0 }
 0x280   :  { %1023 = vmatpush3.bf16.msra.mxu0 %v1261_v14 }
 0x281   :  { %1024 = vmatprep.subr.bf16.mxu0 %v1158_v0 }
 0x284   :  { %1025 = vmatpush3.bf16.msra.mxu0 %v1270_v15 }
 0x285   :  { %1050 = vmatprep.subr.bf16.mxu0 %v1158_v0 }
 0x327   :  { %v316_v60 = vpop.f32.mrf.mxu0 }
 0x328   :  { %v322_v61 = vadd.f32 %v316_v60, %v103_v59 }
 0x329   :  { %v988_v62 = vpop.f32.mrf.mxu0 }
 0x32a   :  { %v323_v63 = vmul.f32 %v322_v61, %v1311_v24 }
 0x32b   :  { %v319_v4 = vpop.f32.mrf.mxu0 }
 0x32c   :  { %1130 = vtanh.f32 %v323_v63 }
 0x32d   :  { %v989_v5 = vpop.f32.mrf.mxu0 }
 0x339   :  { %v1131_v6 = vpop.eup %1130 }
 0x33a   :  { %328 = vrot.lane.b32.xlu1 %v1131_v6, %s1162_s15  ;;  %v325_v7 = vadd.f32 1.0, %v1131_v6 }
 0x33c   :  { %v326_v8 = vmul.f32 0.5, %v325_v7 }
 0x33e   :  { %v336_v10 = vmul.f32 %v334_v9, %v326_v8 }
 0x340   :  { %338 = vrot.lane.b32.xlu0 %v336_v10, %s1163_s2 }
 0x3ac   :  { %v329_v16 = vpop.permute.xlu1 %328 }
 0x3ad   :  { %v331_v17 = vmul.f32 %v329_v16, %v326_v8 }
 0x3b2   :  { %v339_v18 = vpop.permute.xlu0 %338 }
 0x3b3   :  { %v341_v21 = vadd.f32 %v339_v18, %v331_v17 }
 0x3b5   :  { %1132 = vtanh.f32 %v341_v21 }
 0x3c2   :  { %v1133_v22 = vpop.eup %1132 }
 0x3c3   :  { %344 = vrot.lane.b32.xlu1 %v1133_v22, %s1163_s2 }
 0x3c7   :  { %409 = vrot.lane.b32.xlu1 %v341_v21, %s1164_s16 }
 0x435   :  { %v345_v23 = vpop.permute.xlu1 %344 }
 0x436   :  { %v347_v25 = vmul.f32 %v345_v23, %v326_v8 }
 0x438   :  { %349 = vrot.lane.b32.xlu0 %v347_v25, %s1162_s15  ;;  %v116_v25 = vadd.f32 %v1308_v20, %v1369_v56 }
 0x439   :  { %v410_v39 = vpop.permute.xlu1 %409 }
 0x4aa   :  { %v350_v26 = vpop.permute.xlu0 %349 }
 0x4ab   :  { %v352_v27 = vsel %vm23_vm2, %v350_v26, 0.0  ;;  %v840_v28 = vpack.c.bf16 %v350_v26, %v350_v26 }
 0x4ac   :  { %838 = vst [vmem:[%s1545_s4 + $0x8] sm:$0xff] %v352_v27 }
 0x4ad   :  { %1007 = vmatmul.mubr.msk.bf16.vlgmr.msra.gmra.mxu1 %vm1337_vm4, %v840_v28 }
 0x4ae   :  { %1031 = vmatpush3.bf16.msra.mxu1 %v1194_v1  ;;  %1046 = vmatprep.mubr.msk.bf16.mxu1 %vm1159_vm0, %v1158_v0 }
 0x4af   :  { %1032 = vmatprep.subr.bf16.mxu1 %v1158_v0 }
 0x4b2   :  { %1033 = vmatpush3.bf16.msra.mxu1 %v1202_v2 }
 0x4b3   :  { %1034 = vmatprep.subr.bf16.mxu1 %v1158_v0 }
 0x4b6   :  { %1035 = vmatpush3.bf16.msra.mxu1 %v1208_v3 }
 0x4b7   :  { %1036 = vmatprep.subr.bf16.mxu1 %v1158_v0 }
 0x4ba   :  { %1037 = vmatpush3.bf16.msra.mxu1 %v1233_v11 }
 0x4bb   :  { %1038 = vmatprep.subr.bf16.mxu1 %v1158_v0 }
 0x4be   :  { %1039 = vmatpush3.bf16.msra.mxu1 %v1243_v12 }
 0x4bf   :  { %1040 = vmatprep.subr.bf16.mxu1 %v1158_v0 }
 0x4c2   :  { %1041 = vmatpush3.bf16.msra.mxu1 %v1252_v13 }
 0x4c3   :  { %1042 = vmatprep.subr.bf16.mxu1 %v1158_v0 }
 0x4c6   :  { %1043 = vmatpush3.bf16.msra.mxu1 %v1261_v14 }
 0x4c7   :  { %1044 = vmatprep.subr.bf16.mxu1 %v1158_v0 }
 0x4ca   :  { %1045 = vmatpush3.bf16.msra.mxu1 %v1270_v15 }
 0x4cb   :  { %1070 = vmatprep.subr.bf16.mxu1 %v1158_v0 }
 0x56d   :  { %v392_v30 = vpop.f32.mrf.mxu1 }
 0x56e   :  { %v398_v31 = vadd.f32 %v392_v30, %v108_v29 }
 0x56f   :  { %v1008_v32 = vpop.f32.mrf.mxu1 }
 0x570   :  { %v399_v33 = vmul.f32 %v398_v31, %v1311_v24 }
 0x571   :  { %v395_v34 = vpop.f32.mrf.mxu1 }
 0x572   :  { %1134 = vtanh.f32 %v399_v33 }
 0x573   :  { %v1009_v35 = vpop.f32.mrf.mxu1 }
 0x57f   :  { %v1135_v36 = vpop.eup %1134 }
 0x580   :  { %404 = vrot.lane.b32.xlu0 %v1135_v36, %s1162_s15  ;;  %v401_v37 = vadd.f32 1.0, %v1135_v36 }
 0x582   :  { %v402_v38 = vmul.f32 0.5, %v401_v37 }
 0x584   :  { %v412_v40 = vmul.f32 %v410_v39, %v402_v38 }
 0x586   :  { %414 = vrot.lane.b32.xlu1 %v412_v40, %s1163_s2 }
 0x5f2   :  { %v405_v41 = vpop.permute.xlu0 %404 }
 0x5f3   :  { %v407_v42 = vmul.f32 %v405_v41, %v402_v38 }
 0x5f8   :  { %v415_v19 = vpop.permute.xlu1 %414 }
 0x5f9   :  { %v417_v43 = vadd.f32 %v415_v19, %v407_v42 }
 0x5fb   :  { %1136 = vtanh.f32 %v417_v43 }
 0x608   :  { %v1137_v44 = vpop.eup %1136 }
 0x609   :  { %420 = vrot.lane.b32.xlu0 %v1137_v44, %s1163_s2 }
 0x60d   :  { %485 = vrot.lane.b32.xlu0 %v417_v43, %s1164_s16 }
 0x67b   :  { %v421_v45 = vpop.permute.xlu0 %420 }
 0x67c   :  { %v423_v46 = vmul.f32 %v421_v45, %v402_v38 }
 0x67e   :  { %425 = vrot.lane.b32.xlu1 %v423_v46, %s1162_s15 }
 0x67f   :  { %v486_v6 = vpop.permute.xlu0 %485 }
 0x6f0   :  { %v426_v47 = vpop.permute.xlu1 %425 }
 0x6f1   :  { %v428_v48 = vsel %vm23_vm2, %v426_v47, 0.0  ;;  %v844_v49 = vpack.c.bf16 %v426_v47, %v426_v47 }
 0x6f2   :  { %842 = vst [vmem:[%s1545_s4 + $0x10] sm:$0xff] %v428_v48 }
 0x6f3   :  { %1027 = vmatmul.mubr.msk.bf16.vlgmr.msra.gmra.mxu0 %vm1337_vm4, %v844_v49 }
 0x6f4   :  { %1051 = vmatpush3.bf16.msra.mxu0 %v1194_v1  ;;  %1066 = vmatprep.mubr.msk.bf16.mxu0 %vm1159_vm0, %v1158_v0 }
 0x6f5   :  { %1052 = vmatprep.subr.bf16.mxu0 %v1158_v0 }
 0x6f8   :  { %1053 = vmatpush3.bf16.msra.mxu0 %v1202_v2 }
 0x6f9   :  { %1054 = vmatprep.subr.bf16.mxu0 %v1158_v0 }
 0x6fc   :  { %1055 = vmatpush3.bf16.msra.mxu0 %v1208_v3 }
 0x6fd   :  { %1056 = vmatprep.subr.bf16.mxu0 %v1158_v0 }
 0x700   :  { %1057 = vmatpush3.bf16.msra.mxu0 %v1233_v11 }
 0x701   :  { %1058 = vmatprep.subr.bf16.mxu0 %v1158_v0 }
 0x704   :  { %1059 = vmatpush3.bf16.msra.mxu0 %v1243_v12 }
 0x705   :  { %1060 = vmatprep.subr.bf16.mxu0 %v1158_v0 }
 0x708   :  { %1061 = vmatpush3.bf16.msra.mxu0 %v1252_v13 }
 0x709   :  { %1062 = vmatprep.subr.bf16.mxu0 %v1158_v0 }
 0x70c   :  { %1063 = vmatpush3.bf16.msra.mxu0 %v1261_v14 }
 0x70d   :  { %1064 = vmatprep.subr.bf16.mxu0 %v1158_v0 }
 0x710   :  { %1065 = vmatpush3.bf16.msra.mxu0 %v1270_v15 }
 0x711   :  { %1090 = vmatprep.subr.bf16.mxu0 %v1158_v0 }
 0x7b3   :  { %v468_v52 = vpop.f32.mrf.mxu0 }
 0x7b4   :  { %v474_v54 = vadd.f32 %v468_v52, %v111_v51 }
 0x7b5   :  { %v1028_v59 = vpop.f32.mrf.mxu0 }
 0x7b6   :  { %v475_v60 = vmul.f32 %v474_v54, %v1311_v24 }
 0x7b7   :  { %v471_v61 = vpop.f32.mrf.mxu0 }
 0x7b8   :  { %1138 = vtanh.f32 %v475_v60 }
 0x7b9   :  { %v1029_v62 = vpop.f32.mrf.mxu0 }
 0x7c5   :  { %v1139_v63 = vpop.eup %1138 }
 0x7c6   :  { %480 = vrot.lane.b32.xlu1 %v1139_v63, %s1162_s15  ;;  %v477_v4 = vadd.f32 1.0, %v1139_v63  ;;  %v124_v63 = vadd.f32 %v1367_v55, %v1308_v20 }
 0x7c8   :  { %v478_v5 = vmul.f32 0.5, %v477_v4 }
 0x7ca   :  { %v488_v7 = vmul.f32 %v486_v6, %v478_v5 }
 0x7cc   :  { %490 = vrot.lane.b32.xlu0 %v488_v7, %s1163_s2 }
 0x838   :  { %v481_v8 = vpop.permute.xlu1 %480 }
 0x839   :  { %v483_v9 = vmul.f32 %v481_v8, %v478_v5 }
 0x83e   :  { %v491_v53 = vpop.permute.xlu0 %490 }
 0x83f   :  { %v493_v10 = vadd.f32 %v491_v53, %v483_v9 }
 0x841   :  { %1140 = vtanh.f32 %v493_v10 }
 0x84e   :  { %v1141_v16 = vpop.eup %1140 }
 0x84f   :  { %496 = vrot.lane.b32.xlu1 %v1141_v16, %s1163_s2 }
 0x853   :  { %561 = vrot.lane.b32.xlu1 %v493_v10, %s1164_s16 }
 0x8c1   :  { %v497_v17 = vpop.permute.xlu1 %496 }
 0x8c2   :  { %v499_v18 = vmul.f32 %v497_v17, %v478_v5 }
 0x8c4   :  { %501 = vrot.lane.b32.xlu0 %v499_v18, %s1162_s15 }
 0x8c5   :  { %v562_v35 = vpop.permute.xlu1 %561 }
 0x936   :  { %v502_v21 = vpop.permute.xlu0 %501 }
 0x937   :  { %v504_v22 = vsel %vm23_vm2, %v502_v21, 0.0  ;;  %v848_v23 = vpack.c.bf16 %v502_v21, %v502_v21 }
 0x938   :  { %846 = vst [vmem:[%s1545_s4 + $0x18] sm:$0xff] %v504_v22 }
 0x939   :  { %1047 = vmatmul.mubr.msk.bf16.vlgmr.msra.gmra.mxu1 %vm1337_vm4, %v848_v23 }
 0x93a   :  { %1071 = vmatpush3.bf16.msra.mxu1 %v1194_v1  ;;  %1086 = vmatprep.mubr.msk.bf16.mxu1 %vm1159_vm0, %v1158_v0 }
 0x93b   :  { %1072 = vmatprep.subr.bf16.mxu1 %v1158_v0 }
 0x93e   :  { %1073 = vmatpush3.bf16.msra.mxu1 %v1202_v2 }
 0x93f   :  { %1074 = vmatprep.subr.bf16.mxu1 %v1158_v0 }
 0x942   :  { %1075 = vmatpush3.bf16.msra.mxu1 %v1208_v3 }
 0x943   :  { %1076 = vmatprep.subr.bf16.mxu1 %v1158_v0 }
 0x946   :  { %1077 = vmatpush3.bf16.msra.mxu1 %v1233_v11 }
 0x947   :  { %1078 = vmatprep.subr.bf16.mxu1 %v1158_v0 }
 0x94a   :  { %1079 = vmatpush3.bf16.msra.mxu1 %v1243_v12 }
 0x94b   :  { %1080 = vmatprep.subr.bf16.mxu1 %v1158_v0 }
 0x94e   :  { %1081 = vmatpush3.bf16.msra.mxu1 %v1252_v13 }
 0x94f   :  { %1082 = vmatprep.subr.bf16.mxu1 %v1158_v0 }
 0x952   :  { %1083 = vmatpush3.bf16.msra.mxu1 %v1261_v14 }
 0x953   :  { %1084 = vmatprep.subr.bf16.mxu1 %v1158_v0 }
 0x956   :  { %1085 = vmatpush3.bf16.msra.mxu1 %v1270_v15 }
 0x9f9   :  { %v544_v26 = vpop.f32.mrf.mxu1 }
 0x9fa   :  { %v550_v27 = vadd.f32 %v544_v26, %v116_v25 }
 0x9fb   :  { %v1048_v28 = vpop.f32.mrf.mxu1 }
 0x9fc   :  { %v551_v29 = vmul.f32 %v550_v27, %v1311_v24 }
 0x9fd   :  { %v547_v30 = vpop.f32.mrf.mxu1 }
 0x9fe   :  { %1142 = vtanh.f32 %v551_v29 }
 0x9ff   :  { %v1049_v31 = vpop.f32.mrf.mxu1 }
 0xa00   :  { %v127_v31 = vadd.f32 %v1371_v57, %v1308_v20 }
 0xa0b   :  { %v1143_v32 = vpop.eup %1142 }
 0xa0c   :  { %556 = vrot.lane.b32.xlu0 %v1143_v32, %s1162_s15  ;;  %v553_v33 = vadd.f32 1.0, %v1143_v32 }
 0xa0e   :  { %v554_v34 = vmul.f32 0.5, %v553_v33 }
 0xa10   :  { %v564_v36 = vmul.f32 %v562_v35, %v554_v34 }
 0xa12   :  { %566 = vrot.lane.b32.xlu1 %v564_v36, %s1163_s2 }
 0xa7e   :  { %v557_v37 = vpop.permute.xlu0 %556 }
 0xa7f   :  { %v559_v38 = vmul.f32 %v557_v37, %v554_v34 }
 0xa84   :  { %v567_v56 = vpop.permute.xlu1 %566 }
 0xa85   :  { %v569_v39 = vadd.f32 %v567_v56, %v559_v38 }
 0xa87   :  { %1144 = vtanh.f32 %v569_v39 }
 0xa94   :  { %v1145_v40 = vpop.eup %1144 }
 0xa95   :  { %572 = vrot.lane.b32.xlu0 %v1145_v40, %s1163_s2 }
 0xa99   :  { %637 = vrot.lane.b32.xlu0 %v569_v39, %s1164_s16 }
 0xb07   :  { %v573_v41 = vpop.permute.xlu0 %572 }
 0xb08   :  { %v575_v42 = vmul.f32 %v573_v41, %v554_v34 }
 0xb0a   :  { %577 = vrot.lane.b32.xlu1 %v575_v42, %s1162_s15 }
 0xb0b   :  { %v638_v48 = vpop.permute.xlu0 %637 }
 0xb7c   :  { %v578_v19 = vpop.permute.xlu1 %577 }
 0xb7d   :  { %v580_v43 = vsel %vm23_vm2, %v578_v19, 0.0  ;;  %v852_v44 = vpack.c.bf16 %v578_v19, %v578_v19 }
 0xb7e   :  { %850 = vst [vmem:[%s1545_s4 + $0x20] sm:$0xff] %v580_v43 }
 0xb7f   :  { %1067 = vmatmul.mubr.msk.bf16.vlgmr.msra.gmra.mxu0 %vm1337_vm4, %v852_v44 }
 0xb80   :  { %1091 = vmatpush3.bf16.msra.mxu0 %v1194_v1  ;;  %1106 = vmatprep.mubr.msk.bf16.mxu0 %vm1159_vm0, %v1158_v0  ;;  %v119_v1 = vadd.f32 %v1308_v20, %v1373_v58 }
 0xb81   :  { %1092 = vmatprep.subr.bf16.mxu0 %v1158_v0 }
 0xb84   :  { %1093 = vmatpush3.bf16.msra.mxu0 %v1202_v2 }
 0xb85   :  { %1094 = vmatprep.subr.bf16.mxu0 %v1158_v0 }
 0xb88   :  { %1095 = vmatpush3.bf16.msra.mxu0 %v1208_v3 }
 0xb89   :  { %1096 = vmatprep.subr.bf16.mxu0 %v1158_v0 }
 0xb8c   :  { %1097 = vmatpush3.bf16.msra.mxu0 %v1233_v11 }
 0xb8d   :  { %1098 = vmatprep.subr.bf16.mxu0 %v1158_v0 }
 0xb90   :  { %1099 = vmatpush3.bf16.msra.mxu0 %v1243_v12 }
 0xb91   :  { %1100 = vmatprep.subr.bf16.mxu0 %v1158_v0 }
 0xb94   :  { %1101 = vmatpush3.bf16.msra.mxu0 %v1252_v13 }
 0xb95   :  { %1102 = vmatprep.subr.bf16.mxu0 %v1158_v0 }
 0xb98   :  { %1103 = vmatpush3.bf16.msra.mxu0 %v1261_v14 }
 0xb99   :  { %1104 = vmatprep.subr.bf16.mxu0 %v1158_v0 }
 0xb9c   :  { %1105 = vmatpush3.bf16.msra.mxu0 %v1270_v15 }
 0xc3f   :  { %v620_v2 = vpop.f32.mrf.mxu0 }
 0xc40   :  { %v626_v3 = vadd.f32 %v620_v2, %v119_v1 }
 0xc41   :  { %v1068_v11 = vpop.f32.mrf.mxu0 }
 0xc42   :  { %v627_v12 = vmul.f32 %v626_v3, %v1311_v24 }
 0xc43   :  { %v623_v45 = vpop.f32.mrf.mxu0 }
 0xc44   :  { %1146 = vtanh.f32 %v627_v12 }
 0xc45   :  { %v1069_v46 = vpop.f32.mrf.mxu0 }
 0xc51   :  { %v1147_v13 = vpop.eup %1146 }
 0xc52   :  { %632 = vrot.lane.b32.xlu1 %v1147_v13, %s1162_s15  ;;  %v629_v47 = vadd.f32 1.0, %v1147_v13 }
 0xc54   :  { %v630_v14 = vmul.f32 0.5, %v629_v47 }
 0xc56   :  { %v640_v0 = vmul.f32 %v638_v48, %v630_v14 }
 0xc58   :  { %642 = vrot.lane.b32.xlu0 %v640_v0, %s1163_s2 }
 0xcc4   :  { %v633_v15 = vpop.permute.xlu1 %632 }
 0xcc5   :  { %v635_v49 = vmul.f32 %v633_v15, %v630_v14 }
 0xcca   :  { %v643_v58 = vpop.permute.xlu0 %642 }
 0xccb   :  { %v645_v51 = vadd.f32 %v643_v58, %v635_v49 }
 0xccd   :  { %1148 = vtanh.f32 %v645_v51 }
 0xcda   :  { %v1149_v52 = vpop.eup %1148 }
 0xcdb   :  { %648 = vrot.lane.b32.xlu1 %v1149_v52, %s1163_s2 }
 0xcdf   :  { %713 = vrot.lane.b32.xlu1 %v645_v51, %s1164_s16 }
 0xd4d   :  { %v649_v54 = vpop.permute.xlu1 %648 }
 0xd4e   :  { %v651_v59 = vmul.f32 %v649_v54, %v630_v14 }
 0xd50   :  { %653 = vrot.lane.b32.xlu0 %v651_v59, %s1162_s15 }
 0xd51   :  { %v714_v17 = vpop.permute.xlu1 %713 }
 0xdc2   :  { %v654_v60 = vpop.permute.xlu0 %653 }
 0xdc3   :  { %v656_v61 = vsel %vm23_vm2, %v654_v60, 0.0  ;;  %v856_v62 = vpack.c.bf16 %v654_v60, %v654_v60 }
 0xdc4   :  { %854 = vst [vmem:[%s1545_s4 + $0x28] sm:$0xff] %v656_v61 }
 0xdc5   :  { %1087 = vmatmul.mubr.msk.bf16.vlgmr.msra.gmra.mxu1 %vm1337_vm4, %v856_v62 }
 0xe85   :  { %v696_v4 = vpop.f32.mrf.mxu1 }
 0xe86   :  { %v702_v5 = vadd.f32 %v696_v4, %v124_v63 }
 0xe87   :  { %v1088_v6 = vpop.f32.mrf.mxu1 }
 0xe88   :  { %v703_v7 = vmul.f32 %v702_v5, %v1311_v24 }
 0xe89   :  { %v699_v8 = vpop.f32.mrf.mxu1 }
 0xe8a   :  { %1150 = vtanh.f32 %v703_v7 }
 0xe8b   :  { %v1089_v9 = vpop.f32.mrf.mxu1 }
 0xe97   :  { %v1151_v53 = vpop.eup %1150 }
 0xe98   :  { %708 = vrot.lane.b32.xlu0 %v1151_v53, %s1162_s15  ;;  %v705_v10 = vadd.f32 1.0, %v1151_v53 }
 0xe9a   :  { %v706_v16 = vmul.f32 0.5, %v705_v10 }
 0xe9c   :  { %v716_v18 = vmul.f32 %v714_v17, %v706_v16 }
 0xe9e   :  { %718 = vrot.lane.b32.xlu1 %v716_v18, %s1163_s2 }
 0xf0a   :  { %v709_v21 = vpop.permute.xlu0 %708 }
 0xf0b   :  { %v711_v22 = vmul.f32 %v709_v21, %v706_v16 }
 0xf10   :  { %v719_v55 = vpop.permute.xlu1 %718 }
 0xf11   :  { %v721_v23 = vadd.f32 %v719_v55, %v711_v22 }
 0xf13   :  { %1152 = vtanh.f32 %v721_v23 }
 0xf20   :  { %v1153_v25 = vpop.eup %1152 }
 0xf21   :  { %724 = vrot.lane.b32.xlu0 %v1153_v25, %s1163_s2 }
 0xf25   :  { %789 = vrot.lane.b32.xlu0 %v721_v23, %s1164_s16 }
 0xf93   :  { %v725_v26 = vpop.permute.xlu0 %724 }
 0xf94   :  { %v727_v27 = vmul.f32 %v725_v26, %v706_v16 }
 0xf96   :  { %729 = vrot.lane.b32.xlu1 %v727_v27, %s1162_s15 }
 0xf97   :  { %v790_v40 = vpop.permute.xlu0 %789 }
0x1008   :  { %v730_v28 = vpop.permute.xlu1 %729 }
0x1009   :  { %v732_v29 = vsel %vm23_vm2, %v730_v28, 0.0  ;;  %v860_v30 = vpack.c.bf16 %v730_v28, %v730_v28 }
0x100a   :  { %858 = vst [vmem:[%s1545_s4 + $0x30] sm:$0xff] %v732_v29 }
0x100b   :  { %1107 = vmatmul.mubr.msk.bf16.vlgmr.msra.gmra.mxu0 %vm1337_vm4, %v860_v30 }
0x10cb   :  { %v772_v32 = vpop.f32.mrf.mxu0 }
0x10cc   :  { %v778_v33 = vadd.f32 %v772_v32, %v127_v31 }
0x10cd   :  { %v1108_v34 = vpop.f32.mrf.mxu0 }
0x10ce   :  { %v779_v35 = vmul.f32 %v778_v33, %v1311_v24 }
0x10cf   :  { %v775_v36 = vpop.f32.mrf.mxu0 }
0x10d0   :  { %1154 = vtanh.f32 %v779_v35 }
0x10d1   :  { %v1109_v37 = vpop.f32.mrf.mxu0 }
0x10dd   :  { %v1155_v38 = vpop.eup %1154 }
0x10de   :  { %784 = vrot.lane.b32.xlu1 %v1155_v38, %s1162_s15  ;;  %v781_v56 = vadd.f32 1.0, %v1155_v38 }
0x10e0   :  { %v782_v39 = vmul.f32 0.5, %v781_v56 }
0x10e2   :  { %v792_v41 = vmul.f32 %v790_v40, %v782_v39 }
0x10e4   :  { %794 = vrot.lane.b32.xlu0 %v792_v41, %s1163_s2 }
0x1150   :  { %v785_v50 = vpop.permute.xlu1 %784 }
0x1151   :  { %v787_v42 = vmul.f32 %v785_v50, %v782_v39 }
0x1156   :  { %v795_v20 = vpop.permute.xlu0 %794 }
0x1157   :  { %v797_v57 = vadd.f32 %v795_v20, %v787_v42 }
0x1159   :  { %1156 = vtanh.f32 %v797_v57 }
0x1166   :  { %v1157_v19 = vpop.eup %1156 }
0x1167   :  { %800 = vrot.lane.b32.xlu1 %v1157_v19, %s1163_s2 }
0x116b   :  { %813 = vrot.lane.b32.xlu1 %v797_v57, %s1164_s16 }
0x11d9   :  { %v801_v24 = vpop.permute.xlu1 %800 }
0x11da   :  { %v803_v43 = vmul.f32 %v801_v24, %v782_v39 }
0x11dc   :  { %805 = vrot.lane.b32.xlu0 %v803_v43, %s1162_s15 }
0x11dd   :  { %v814_v44 = vpop.permute.xlu1 %813 }
0x11de   :  { %816 = vst.msk [vmem:[#allocation4] sm:$0xff] %vm23_vm2, %v814_v44 }
0x124e   :  { %v806_v1 = vpop.permute.xlu0 %805 }
0x124f   :  { %v808_v2 = vsel %vm23_vm2, %v806_v1, 0.0 }
0x1250   :  { %862 = vst [vmem:[%s1545_s4 + $0x38] sm:$0xff] %v808_v2 }

</bundles_post_ra>
